<compile_context>
chip_gen: v7x
topology: tpu7x:2x2x1
jax: 0.10.0
libtpu: 0.0.40
codegen_flags: <defaults>
</compile_context>

<pallas_src>
import functools
import math

import jax
import jax.numpy as jnp
from jax import lax
from jax.experimental import pallas as pl
from jax.experimental.pallas import tpu as pltpu


# --------------------------------------------------------------------------- #
# Kernel
# --------------------------------------------------------------------------- #
def _encoder_layer_kernel(num_heads, eps,
                          x_ref,
                          wqkvT_ref, bqkv_ref,
                          woT_ref, bo_ref,
                          ln1_g_ref, ln1_b_ref,
                          w1T_ref, b1_ref, w2T_ref, b2_ref,
                          ln2_g_ref, ln2_b_ref,
                          out_ref):
    Bb, S, D = x_ref.shape
    H = num_heads
    Dh = D // H

    # ---- hoist small-parameter loads (each ref read exactly once) -----------
    bqkv = bqkv_ref[...]                       # (1, 3D) f32
    bo = bo_ref[...]                           # (1, D)
    g1, be1 = ln1_g_ref[...], ln1_b_ref[...]
    b1, b2 = b1_ref[...], b2_ref[...]
    g2, be2 = ln2_g_ref[...], ln2_b_ref[...]

    # Row-flatten the (Bb, S, D) block; with S % 8 == 0 this flatten is
    # layout-preserving (no hidden VMEM copy).
    x = x_ref[...].astype(jnp.float32).reshape(Bb * S, D)

    # ---- fused QKV projection: one wide matmul (bf16 in, f32 accumulate) ----
    # (1/sqrt(Dh) is already folded into the Q rows of wqkvT / bqkv.)
    qkv = jnp.dot(x.astype(jnp.bfloat16), wqkvT_ref[...],
                  preferred_element_type=jnp.float32) + bqkv        # (Bb*S, 3D)
    q = qkv[:, 0 * D:1 * D].astype(jnp.bfloat16).reshape(Bb, S, D)
    k = qkv[:, 1 * D:2 * D].astype(jnp.bfloat16).reshape(Bb, S, D)
    v = qkv[:, 2 * D:3 * D].astype(jnp.bfloat16).reshape(Bb, S, D)

    # ---- self attention --------------------------------------------------- #
    # Static per-head loop (Mosaic-safe 3-D single-batch-dim einsums); the head
    # outputs are combined with ONE lane concat into a contiguous (rows, D)
    # value, so there are no lane-narrow masked VMEM stores and no scratch slab.
    head_outs = []
    for h in range(H):
        lo, hi = h * Dh, (h + 1) * Dh
        qh = q[:, :, lo:hi]                                          # (Bb, S, Dh)
        kh = k[:, :, lo:hi]
        vh = v[:, :, lo:hi]
        s = jnp.einsum('bqd,bkd->bqk', qh, kh,
                       preferred_element_type=jnp.float32)           # (Bb, S, S)
        s = s - jnp.max(s, axis=-1, keepdims=True)
        p = jnp.exp(s)
        p = p * pl.reciprocal(jnp.sum(p, axis=-1, keepdims=True), approx=True)
        head_outs.append(jnp.einsum('bqk,bkd->bqd', p.astype(jnp.bfloat16), vh,
                                    preferred_element_type=jnp.float32))

    attn = jnp.concatenate(head_outs, axis=-1).reshape(Bb * S, D)    # (rows, D) f32
    attn = jnp.dot(attn.astype(jnp.bfloat16), woT_ref[...],
                   preferred_element_type=jnp.float32) + bo

    # ---- add & norm 1 (post-norm; dropout is eval-mode no-op) ---------------
    h1 = x + attn
    mu = jnp.mean(h1, axis=-1, keepdims=True)
    var = jnp.mean((h1 - mu) ** 2, axis=-1, keepdims=True)
    h1n = (h1 - mu) * lax.rsqrt(var + eps) * g1 + be1

    # ---- feed forward (ReLU) -------------------------------------------------
    ff = jnp.dot(h1n.astype(jnp.bfloat16), w1T_ref[...],
                 preferred_element_type=jnp.float32) + b1
    ff = jnp.maximum(ff, 0.0)
    ff = jnp.dot(ff.astype(jnp.bfloat16), w2T_ref[...],
                 preferred_element_type=jnp.float32) + b2

    # ---- add & norm 2 ---------------------------------------------------------
    h2 = h1n + ff
    mu2 = jnp.mean(h2, axis=-1, keepdims=True)
    var2 = jnp.mean((h2 - mu2) ** 2, axis=-1, keepdims=True)
    out = (h2 - mu2) * lax.rsqrt(var2 + eps) * g2 + be2

    out_ref[...] = out.reshape(Bb, S, D).astype(out_ref.dtype)


# --------------------------------------------------------------------------- #
# Per-generation sizing
# --------------------------------------------------------------------------- #
def _tpu_defaults():
    """Returns (vmem_capacity_bytes, min_grid_steps) for the attached TPU."""
    vmem_cap = 64 * (1 << 20)          # conservative fallback (v7x per-TC VMEM)
    min_steps = 1                      # v5e / v6e: single TC -> single grid step OK
    kind = ""
    try:
        kind = jax.devices()[0].device_kind.lower()
    except Exception:
        pass
    if "v5" in kind or "v6" in kind:
        vmem_cap = 128 * (1 << 20)
    if "v7" in kind:
        vmem_cap = 64 * (1 << 20)
        min_steps = 2                  # 2 TCs/chip: keep both fed via "parallel" axis
    try:
        vmem_cap = int(pltpu.get_tpu_info().vmem_capacity_bytes)
    except Exception:
        pass
    return vmem_cap, min_steps


def _vmem_block_estimate(bb, S, D, ff):
    """Rough bytes of VMEM live for one grid step with batch-block bb."""
    rows = bb * S
    f32, bf16 = 4, 2
    io_blocks = 2 * 2 * rows * D * f32                    # x + out, double-buffered
    # TODO(synk): use pipeline_mode=pl.Buffered(1) on the grid-invariant weight
    # specs instead of counting 2x once single-buffering is load-bearing (v7x, FF=4D).
    weights = 2 * (3 * D * D + D * D + 2 * D * ff) * bf16  # bf16 weights, 2 buffers
    qkv = rows * 3 * D * (f32 + bf16)                      # qkv f32 + q/k/v bf16
    scores = 2 * bb * S * S * f32                          # s and p live per head
    attn = rows * D * (2 * f32 + bf16)                     # concat + proj + bf16 cast
    ln_ffn = rows * (3 * D + ff) * f32                     # h1 / h1n / out / ff
    return io_blocks + weights + qkv + scores + attn + ln_ffn


def _pick_block_b(B, S, D, ff, budget_bytes, min_steps):
    divisors = [d for d in range(1, B + 1) if B % d == 0]
    cands = [d for d in divisors if (B // d) >= min_steps] or [divisors[0]]
    best = cands[0]
    for bb in cands:
        if bb > best and _vmem_block_estimate(bb, S, D, ff) <= budget_bytes:
            best = bb
    return best


# --------------------------------------------------------------------------- #
# One-time parameter preparation (hoisted out of the forward path)
# --------------------------------------------------------------------------- #
def prepare_encoder_params(params, num_heads, weight_dtype=jnp.bfloat16):
    D = params["wq"].shape[0]
    assert D % num_heads == 0, "d_model must be divisible by num_heads"
    scale = 1.0 / math.sqrt(D // num_heads)
    # Fuse QKV weights (pre-transposed so the kernel does x @ W^T) and fold the
    # attention scale into the Q rows.
    wqkvT = jnp.concatenate(
        [params["wq"].T * scale, params["wk"].T, params["wv"].T],
        axis=1).astype(weight_dtype)                                   # (D, 3D)
    bqkv = jnp.concatenate(
        [params["bq"] * scale, params["bk"], params["bv"]]
    ).astype(jnp.float32)[None, :]                                     # (1, 3D)
    f32 = jnp.float32
    return {
        "wqkvT": wqkvT, "bqkv": bqkv,
        "woT": params["wo"].T.astype(weight_dtype),
        "bo": params["bo"].astype(f32)[None, :],
        "ln1_g": params["ln1_g"].astype(f32)[None, :],
        "ln1_b": params["ln1_b"].astype(f32)[None, :],
        "w1T": params["w1"].T.astype(weight_dtype),
        "b1": params["b1"].astype(f32)[None, :],
        "w2T": params["w2"].T.astype(weight_dtype),
        "b2": params["b2"].astype(f32)[None, :],
        "ln2_g": params["ln2_g"].astype(f32)[None, :],
        "ln2_b": params["ln2_b"].astype(f32)[None, :],
    }


# --------------------------------------------------------------------------- #
# Forward wrapper
# --------------------------------------------------------------------------- #
def encoder_trsf_forward(x, prep, *, num_heads, eps=1e-5, block_b=None):
    """x: (B, S, D) float32.  Equivalent to Encoder_TRSF.forward (eval mode)."""
    B, S, D = x.shape
    assert D % num_heads == 0, "d_model must be divisible by num_heads"
    ff = prep["w1T"].shape[1]

    vmem_cap, min_steps = _tpu_defaults()
    vmem_limit = min(int(0.85 * vmem_cap), 100 * (1 << 20))
    if block_b is None:
        block_b = _pick_block_b(B, S, D, ff, int(0.8 * vmem_limit), min_steps)
    assert B % block_b == 0

    args = (
        x,
        prep["wqkvT"], prep["bqkv"],
        prep["woT"], prep["bo"],
        prep["ln1_g"], prep["ln1_b"],
        prep["w1T"], prep["b1"], prep["w2T"], prep["b2"],
        prep["ln2_g"], prep["ln2_b"],
    )

    def full_spec(a):
        zeros = (0,) * a.ndim
        return pl.BlockSpec(a.shape, lambda b, z=zeros: z)

    in_specs = [pl.BlockSpec((block_b, S, D), lambda b: (b, 0, 0))]
    in_specs += [full_spec(a) for a in args[1:]]

    kernel = functools.partial(_encoder_layer_kernel, num_heads, eps)

    return pl.pallas_call(
        kernel,
        out_shape=jax.ShapeDtypeStruct((B, S, D), x.dtype),
        grid=(B // block_b,),
        in_specs=in_specs,
        out_specs=pl.BlockSpec((block_b, S, D), lambda b: (b, 0, 0)),
        compiler_params=pltpu.CompilerParams(
            dimension_semantics=("parallel",),
            vmem_limit_bytes=vmem_limit),
    )(*args)


# --------------------------------------------------------------------------- #
# Pure-JAX f32 reference (nn.TransformerEncoderLayer, post-norm, relu, eval)
# --------------------------------------------------------------------------- #
def _reference(x, params, num_heads, eps=1e-5):
    B, S, D = x.shape
    Dh = D // num_heads
    scale = 1.0 / math.sqrt(Dh)

    def ln(h, g, b):
        mu = jnp.mean(h, -1, keepdims=True)
        var = jnp.mean((h - mu) ** 2, -1, keepdims=True)
        return (h - mu) * lax.rsqrt(var + eps) * g + b

    q = x @ params["wq"].T + params["bq"]
    k = x @ params["wk"].T + params["bk"]
    v = x @ params["wv"].T + params["bv"]
    q = q.reshape(B, S, num_heads, Dh).transpose(0, 2, 1, 3)
    k = k.reshape(B, S, num_heads, Dh).transpose(0, 2, 1, 3)
    v = v.reshape(B, S, num_heads, Dh).transpose(0, 2, 1, 3)
    s = jnp.einsum("bhqd,bhkd->bhqk", q, k) * scale
    p = jax.nn.softmax(s, axis=-1)
    a = jnp.einsum("bhqk,bhkd->bhqd", p, v).transpose(0, 2, 1, 3).reshape(B, S, D)
    a = a @ params["wo"].T + params["bo"]
    h1 = ln(x + a, params["ln1_g"], params["ln1_b"])
    f = jnp.maximum(h1 @ params["w1"].T + params["b1"], 0.0) @ params["w2"].T + params["b2"]
    return ln(h1 + f, params["ln2_g"], params["ln2_b"])


if __name__ == "__main__":
    # Small shapes consistent with the module's (batch, seq, hidden) forward.
    B, S, D, H, FF = 2, 8, 32, 4, 64   # hidden_dim=32, num_heads=4, dim_feedforward=64
    key = jax.random.PRNGKey(0)
    ks = jax.random.split(key, 10)
    std = 0.05
    params = {
        # attention in_proj (split of the (3D, D) in_proj_weight) and out_proj
        "wq": std * jax.random.normal(ks[0], (D, D), jnp.float32),
        "wk": std * jax.random.normal(ks[1], (D, D), jnp.float32),
        "wv": std * jax.random.normal(ks[2], (D, D), jnp.float32),
        "bq": std * jax.random.normal(ks[3], (D,), jnp.float32),
        "bk": std * jax.random.normal(ks[4], (D,), jnp.float32),
        "bv": std * jax.random.normal(ks[5], (D,), jnp.float32),
        "wo": std * jax.random.normal(ks[6], (D, D), jnp.float32),
        "bo": jnp.zeros((D,), jnp.float32),
        # layer norms (PyTorch init: ones / zeros)
        "ln1_g": jnp.ones((D,), jnp.float32),
        "ln1_b": jnp.zeros((D,), jnp.float32),
        "ln2_g": jnp.ones((D,), jnp.float32),
        "ln2_b": jnp.zeros((D,), jnp.float32),
        # feed-forward
        "w1": std * jax.random.normal(ks[7], (FF, D), jnp.float32),
        "b1": std * jax.random.normal(ks[8], (FF,), jnp.float32),
        "w2": std * jax.random.normal(ks[9], (D, FF), jnp.float32),
        "b2": jnp.zeros((D,), jnp.float32),
    }
    x = jax.random.normal(jax.random.fold_in(key, 123), (B, S, D), jnp.float32)

    prep = prepare_encoder_params(params, num_heads=H)          # one-time weight prep
    y = encoder_trsf_forward(x, prep, num_heads=H)
    jax.block_until_ready(y)

    # bf16 MXU operands + approx reciprocal -> compare against the f32 reference
    # with a correspondingly relaxed tolerance (intentional; inference-grade).
    y_ref = _reference(x, params, H)
    assert jnp.allclose(y, y_ref, rtol=2e-2, atol=2e-2), "mismatch vs reference"
    print("KERNEL_OK")
</pallas_src>

<mosaic_0001>
module attributes {stable_mosaic.version = 11 : i64} {
  func.func @_encoder_layer_kernel(%arg0: i32, %arg1: memref<2x8x32xf32, #tpu.memory_space<vmem>>, %arg2: memref<32x96xbf16, #tpu.memory_space<vmem>>, %arg3: memref<1x96xf32, #tpu.memory_space<vmem>>, %arg4: memref<32x32xbf16, #tpu.memory_space<vmem>>, %arg5: memref<1x32xf32, #tpu.memory_space<vmem>>, %arg6: memref<1x32xf32, #tpu.memory_space<vmem>>, %arg7: memref<1x32xf32, #tpu.memory_space<vmem>>, %arg8: memref<32x64xbf16, #tpu.memory_space<vmem>>, %arg9: memref<1x64xf32, #tpu.memory_space<vmem>>, %arg10: memref<64x32xbf16, #tpu.memory_space<vmem>>, %arg11: memref<1x32xf32, #tpu.memory_space<vmem>>, %arg12: memref<1x32xf32, #tpu.memory_space<vmem>>, %arg13: memref<1x32xf32, #tpu.memory_space<vmem>>, %arg14: memref<2x8x32xf32, #tpu.memory_space<vmem>>) attributes {dimension_semantics = [#tpu.dimension_semantics<parallel>], iteration_bounds = array<i64: 1>, scalar_prefetch = 0 : i64, scratch_operands = 0 : i64, tpu.core_type = #tpu.core_type<tc>, window_params = [{transform_indices = @transform_0, window_bounds = array<i64: 2, 8, 32>}, {pipeline_mode = #tpu.pipeline_mode<synchronous>, transform_indices = @transform_1, window_bounds = array<i64: 32, 96>}, {pipeline_mode = #tpu.pipeline_mode<synchronous>, transform_indices = @transform_2, window_bounds = array<i64: 1, 96>}, {pipeline_mode = #tpu.pipeline_mode<synchronous>, transform_indices = @transform_3, window_bounds = array<i64: 32, 32>}, {pipeline_mode = #tpu.pipeline_mode<synchronous>, transform_indices = @transform_4, window_bounds = array<i64: 1, 32>}, {pipeline_mode = #tpu.pipeline_mode<synchronous>, transform_indices = @transform_5, window_bounds = array<i64: 1, 32>}, {pipeline_mode = #tpu.pipeline_mode<synchronous>, transform_indices = @transform_6, window_bounds = array<i64: 1, 32>}, {pipeline_mode = #tpu.pipeline_mode<synchronous>, transform_indices = @transform_7, window_bounds = array<i64: 32, 64>}, {pipeline_mode = #tpu.pipeline_mode<synchronous>, transform_indices = @transform_8, window_bounds = array<i64: 1, 64>}, {pipeline_mode = #tpu.pipeline_mode<synchronous>, transform_indices = @transform_9, window_bounds = array<i64: 64, 32>}, {pipeline_mode = #tpu.pipeline_mode<synchronous>, transform_indices = @transform_10, window_bounds = array<i64: 1, 32>}, {pipeline_mode = #tpu.pipeline_mode<synchronous>, transform_indices = @transform_11, window_bounds = array<i64: 1, 32>}, {pipeline_mode = #tpu.pipeline_mode<synchronous>, transform_indices = @transform_12, window_bounds = array<i64: 1, 32>}, {transform_indices = @transform_13, window_bounds = array<i64: 2, 8, 32>}]} {
    %c0 = arith.constant 0 : index
    %c0_0 = arith.constant 0 : index
    %0 = vector.load %arg3[%c0, %c0_0] : memref<1x96xf32, #tpu.memory_space<vmem>>, vector<1x96xf32>
    %c0_1 = arith.constant 0 : index
    %c0_2 = arith.constant 0 : index
    %1 = vector.load %arg5[%c0_1, %c0_2] : memref<1x32xf32, #tpu.memory_space<vmem>>, vector<1x32xf32>
    %c0_3 = arith.constant 0 : index
    %c0_4 = arith.constant 0 : index
    %2 = vector.load %arg6[%c0_3, %c0_4] : memref<1x32xf32, #tpu.memory_space<vmem>>, vector<1x32xf32>
    %c0_5 = arith.constant 0 : index
    %c0_6 = arith.constant 0 : index
    %3 = vector.load %arg7[%c0_5, %c0_6] : memref<1x32xf32, #tpu.memory_space<vmem>>, vector<1x32xf32>
    %c0_7 = arith.constant 0 : index
    %c0_8 = arith.constant 0 : index
    %4 = vector.load %arg9[%c0_7, %c0_8] : memref<1x64xf32, #tpu.memory_space<vmem>>, vector<1x64xf32>
    %c0_9 = arith.constant 0 : index
    %c0_10 = arith.constant 0 : index
    %5 = vector.load %arg11[%c0_9, %c0_10] : memref<1x32xf32, #tpu.memory_space<vmem>>, vector<1x32xf32>
    %c0_11 = arith.constant 0 : index
    %c0_12 = arith.constant 0 : index
    %6 = vector.load %arg12[%c0_11, %c0_12] : memref<1x32xf32, #tpu.memory_space<vmem>>, vector<1x32xf32>
    %c0_13 = arith.constant 0 : index
    %c0_14 = arith.constant 0 : index
    %7 = vector.load %arg13[%c0_13, %c0_14] : memref<1x32xf32, #tpu.memory_space<vmem>>, vector<1x32xf32>
    %c0_15 = arith.constant 0 : index
    %c0_16 = arith.constant 0 : index
    %c0_17 = arith.constant 0 : index
    %8 = vector.load %arg1[%c0_15, %c0_16, %c0_17] : memref<2x8x32xf32, #tpu.memory_space<vmem>>, vector<2x8x32xf32>
    %9 = vector.shape_cast %8 : vector<2x8x32xf32> to vector<16x32xf32>
    %10 = arith.truncf %9 : vector<16x32xf32> to vector<16x32xbf16>
    %c0_18 = arith.constant 0 : index
    %c0_19 = arith.constant 0 : index
    %11 = vector.load %arg2[%c0_18, %c0_19] : memref<32x96xbf16, #tpu.memory_space<vmem>>, vector<32x96xbf16>
    %cst = arith.constant dense<0.000000e+00> : vector<16x96xf32>
    %12 = tpu.matmul %10, %11, %cst {dimension_numbers = #tpu.dot_dimension_numbers<[1], [0], [0], [1], [0, 0, 1, 1], [], []>} : vector<16x32xbf16>, vector<32x96xbf16>, vector<16x96xf32> -> vector<16x96xf32>
    %13 = vector.broadcast %0 : vector<1x96xf32> to vector<16x96xf32>
    %14 = arith.addf %12, %13 : vector<16x96xf32>
    %15 = vector.extract_strided_slice %14 {offsets = [0, 0], sizes = [16, 32], strides = [1, 1]} : vector<16x96xf32> to vector<16x32xf32>
    %16 = arith.truncf %15 : vector<16x32xf32> to vector<16x32xbf16>
    %17 = vector.shape_cast %16 : vector<16x32xbf16> to vector<2x8x32xbf16>
    %18 = vector.extract_strided_slice %14 {offsets = [0, 32], sizes = [16, 32], strides = [1, 1]} : vector<16x96xf32> to vector<16x32xf32>
    %19 = arith.truncf %18 : vector<16x32xf32> to vector<16x32xbf16>
    %20 = vector.shape_cast %19 : vector<16x32xbf16> to vector<2x8x32xbf16>
    %21 = vector.extract_strided_slice %14 {offsets = [0, 64], sizes = [16, 32], strides = [1, 1]} : vector<16x96xf32> to vector<16x32xf32>
    %22 = arith.truncf %21 : vector<16x32xf32> to vector<16x32xbf16>
    %23 = vector.shape_cast %22 : vector<16x32xbf16> to vector<2x8x32xbf16>
    %24 = vector.extract_strided_slice %17 {offsets = [0, 0, 0], sizes = [2, 8, 8], strides = [1, 1, 1]} : vector<2x8x32xbf16> to vector<2x8x8xbf16>
    %25 = vector.extract_strided_slice %20 {offsets = [0, 0, 0], sizes = [2, 8, 8], strides = [1, 1, 1]} : vector<2x8x32xbf16> to vector<2x8x8xbf16>
    %26 = vector.extract_strided_slice %23 {offsets = [0, 0, 0], sizes = [2, 8, 8], strides = [1, 1, 1]} : vector<2x8x32xbf16> to vector<2x8x8xbf16>
    "tpu.trace_start"() <{level = 10 : i32, message = "bqd,bkd->bqk"}> : () -> ()
    %cst_20 = arith.constant dense<0.000000e+00> : vector<2x8x8xf32>
    %27 = tpu.matmul %24, %25, %cst_20 {dimension_numbers = #tpu.dot_dimension_numbers<[2], [2], [1], [1], [0, 0, 0, 1, 1, 1], [0], [0]>} : vector<2x8x8xbf16>, vector<2x8x8xbf16>, vector<2x8x8xf32> -> vector<2x8x8xf32>
    "tpu.trace_stop"() : () -> ()
    %cst_21 = arith.constant dense<0xFF800000> : vector<2x8xf32>
    %28 = vector.multi_reduction <maximumf>, %27, %cst_21 [2] : vector<2x8x8xf32> to vector<2x8xf32>
    %29 = vector.shape_cast %28 : vector<2x8xf32> to vector<2x8x1xf32>
    %30 = vector.broadcast %29 : vector<2x8x1xf32> to vector<2x8x8xf32>
    %31 = arith.subf %27, %30 : vector<2x8x8xf32>
    %32 = math.exp %31 : vector<2x8x8xf32>
    %cst_22 = arith.constant dense<0.000000e+00> : vector<2x8xf32>
    %33 = vector.multi_reduction <add>, %32, %cst_22 [2] : vector<2x8x8xf32> to vector<2x8xf32>
    %34 = vector.shape_cast %33 : vector<2x8xf32> to vector<2x8x1xf32>
    %35 = tpu.reciprocal %34 {approx = true} : vector<2x8x1xf32> -> vector<2x8x1xf32>
    %36 = vector.broadcast %35 : vector<2x8x1xf32> to vector<2x8x8xf32>
    %37 = arith.mulf %32, %36 : vector<2x8x8xf32>
    %38 = arith.truncf %37 : vector<2x8x8xf32> to vector<2x8x8xbf16>
    "tpu.trace_start"() <{level = 10 : i32, message = "bqk,bkd->bqd"}> : () -> ()
    %cst_23 = arith.constant dense<0.000000e+00> : vector<2x8x8xf32>
    %39 = tpu.matmul %38, %26, %cst_23 {dimension_numbers = #tpu.dot_dimension_numbers<[2], [1], [1], [2], [0, 0, 0, 1, 1, 2], [0], [0]>} : vector<2x8x8xbf16>, vector<2x8x8xbf16>, vector<2x8x8xf32> -> vector<2x8x8xf32>
    "tpu.trace_stop"() : () -> ()
    %40 = vector.extract_strided_slice %17 {offsets = [0, 0, 8], sizes = [2, 8, 8], strides = [1, 1, 1]} : vector<2x8x32xbf16> to vector<2x8x8xbf16>
    %41 = vector.extract_strided_slice %20 {offsets = [0, 0, 8], sizes = [2, 8, 8], strides = [1, 1, 1]} : vector<2x8x32xbf16> to vector<2x8x8xbf16>
    %42 = vector.extract_strided_slice %23 {offsets = [0, 0, 8], sizes = [2, 8, 8], strides = [1, 1, 1]} : vector<2x8x32xbf16> to vector<2x8x8xbf16>
    "tpu.trace_start"() <{level = 10 : i32, message = "bqd,bkd->bqk"}> : () -> ()
    %cst_24 = arith.constant dense<0.000000e+00> : vector<2x8x8xf32>
    %43 = tpu.matmul %40, %41, %cst_24 {dimension_numbers = #tpu.dot_dimension_numbers<[2], [2], [1], [1], [0, 0, 0, 1, 1, 1], [0], [0]>} : vector<2x8x8xbf16>, vector<2x8x8xbf16>, vector<2x8x8xf32> -> vector<2x8x8xf32>
    "tpu.trace_stop"() : () -> ()
    %cst_25 = arith.constant dense<0xFF800000> : vector<2x8xf32>
    %44 = vector.multi_reduction <maximumf>, %43, %cst_25 [2] : vector<2x8x8xf32> to vector<2x8xf32>
    %45 = vector.shape_cast %44 : vector<2x8xf32> to vector<2x8x1xf32>
    %46 = vector.broadcast %45 : vector<2x8x1xf32> to vector<2x8x8xf32>
    %47 = arith.subf %43, %46 : vector<2x8x8xf32>
    %48 = math.exp %47 : vector<2x8x8xf32>
    %cst_26 = arith.constant dense<0.000000e+00> : vector<2x8xf32>
    %49 = vector.multi_reduction <add>, %48, %cst_26 [2] : vector<2x8x8xf32> to vector<2x8xf32>
    %50 = vector.shape_cast %49 : vector<2x8xf32> to vector<2x8x1xf32>
    %51 = tpu.reciprocal %50 {approx = true} : vector<2x8x1xf32> -> vector<2x8x1xf32>
    %52 = vector.broadcast %51 : vector<2x8x1xf32> to vector<2x8x8xf32>
    %53 = arith.mulf %48, %52 : vector<2x8x8xf32>
    %54 = arith.truncf %53 : vector<2x8x8xf32> to vector<2x8x8xbf16>
    "tpu.trace_start"() <{level = 10 : i32, message = "bqk,bkd->bqd"}> : () -> ()
    %cst_27 = arith.constant dense<0.000000e+00> : vector<2x8x8xf32>
    %55 = tpu.matmul %54, %42, %cst_27 {dimension_numbers = #tpu.dot_dimension_numbers<[2], [1], [1], [2], [0, 0, 0, 1, 1, 2], [0], [0]>} : vector<2x8x8xbf16>, vector<2x8x8xbf16>, vector<2x8x8xf32> -> vector<2x8x8xf32>
    "tpu.trace_stop"() : () -> ()
    %56 = vector.extract_strided_slice %17 {offsets = [0, 0, 16], sizes = [2, 8, 8], strides = [1, 1, 1]} : vector<2x8x32xbf16> to vector<2x8x8xbf16>
    %57 = vector.extract_strided_slice %20 {offsets = [0, 0, 16], sizes = [2, 8, 8], strides = [1, 1, 1]} : vector<2x8x32xbf16> to vector<2x8x8xbf16>
    %58 = vector.extract_strided_slice %23 {offsets = [0, 0, 16], sizes = [2, 8, 8], strides = [1, 1, 1]} : vector<2x8x32xbf16> to vector<2x8x8xbf16>
    "tpu.trace_start"() <{level = 10 : i32, message = "bqd,bkd->bqk"}> : () -> ()
    %cst_28 = arith.constant dense<0.000000e+00> : vector<2x8x8xf32>
    %59 = tpu.matmul %56, %57, %cst_28 {dimension_numbers = #tpu.dot_dimension_numbers<[2], [2], [1], [1], [0, 0, 0, 1, 1, 1], [0], [0]>} : vector<2x8x8xbf16>, vector<2x8x8xbf16>, vector<2x8x8xf32> -> vector<2x8x8xf32>
    "tpu.trace_stop"() : () -> ()
    %cst_29 = arith.constant dense<0xFF800000> : vector<2x8xf32>
    %60 = vector.multi_reduction <maximumf>, %59, %cst_29 [2] : vector<2x8x8xf32> to vector<2x8xf32>
    %61 = vector.shape_cast %60 : vector<2x8xf32> to vector<2x8x1xf32>
    %62 = vector.broadcast %61 : vector<2x8x1xf32> to vector<2x8x8xf32>
    %63 = arith.subf %59, %62 : vector<2x8x8xf32>
    %64 = math.exp %63 : vector<2x8x8xf32>
    %cst_30 = arith.constant dense<0.000000e+00> : vector<2x8xf32>
    %65 = vector.multi_reduction <add>, %64, %cst_30 [2] : vector<2x8x8xf32> to vector<2x8xf32>
    %66 = vector.shape_cast %65 : vector<2x8xf32> to vector<2x8x1xf32>
    %67 = tpu.reciprocal %66 {approx = true} : vector<2x8x1xf32> -> vector<2x8x1xf32>
    %68 = vector.broadcast %67 : vector<2x8x1xf32> to vector<2x8x8xf32>
    %69 = arith.mulf %64, %68 : vector<2x8x8xf32>
    %70 = arith.truncf %69 : vector<2x8x8xf32> to vector<2x8x8xbf16>
    "tpu.trace_start"() <{level = 10 : i32, message = "bqk,bkd->bqd"}> : () -> ()
    %cst_31 = arith.constant dense<0.000000e+00> : vector<2x8x8xf32>
    %71 = tpu.matmul %70, %58, %cst_31 {dimension_numbers = #tpu.dot_dimension_numbers<[2], [1], [1], [2], [0, 0, 0, 1, 1, 2], [0], [0]>} : vector<2x8x8xbf16>, vector<2x8x8xbf16>, vector<2x8x8xf32> -> vector<2x8x8xf32>
    "tpu.trace_stop"() : () -> ()
    %72 = vector.extract_strided_slice %17 {offsets = [0, 0, 24], sizes = [2, 8, 8], strides = [1, 1, 1]} : vector<2x8x32xbf16> to vector<2x8x8xbf16>
    %73 = vector.extract_strided_slice %20 {offsets = [0, 0, 24], sizes = [2, 8, 8], strides = [1, 1, 1]} : vector<2x8x32xbf16> to vector<2x8x8xbf16>
    %74 = vector.extract_strided_slice %23 {offsets = [0, 0, 24], sizes = [2, 8, 8], strides = [1, 1, 1]} : vector<2x8x32xbf16> to vector<2x8x8xbf16>
    "tpu.trace_start"() <{level = 10 : i32, message = "bqd,bkd->bqk"}> : () -> ()
    %cst_32 = arith.constant dense<0.000000e+00> : vector<2x8x8xf32>
    %75 = tpu.matmul %72, %73, %cst_32 {dimension_numbers = #tpu.dot_dimension_numbers<[2], [2], [1], [1], [0, 0, 0, 1, 1, 1], [0], [0]>} : vector<2x8x8xbf16>, vector<2x8x8xbf16>, vector<2x8x8xf32> -> vector<2x8x8xf32>
    "tpu.trace_stop"() : () -> ()
    %cst_33 = arith.constant dense<0xFF800000> : vector<2x8xf32>
    %76 = vector.multi_reduction <maximumf>, %75, %cst_33 [2] : vector<2x8x8xf32> to vector<2x8xf32>
    %77 = vector.shape_cast %76 : vector<2x8xf32> to vector<2x8x1xf32>
    %78 = vector.broadcast %77 : vector<2x8x1xf32> to vector<2x8x8xf32>
    %79 = arith.subf %75, %78 : vector<2x8x8xf32>
    %80 = math.exp %79 : vector<2x8x8xf32>
    %cst_34 = arith.constant dense<0.000000e+00> : vector<2x8xf32>
    %81 = vector.multi_reduction <add>, %80, %cst_34 [2] : vector<2x8x8xf32> to vector<2x8xf32>
    %82 = vector.shape_cast %81 : vector<2x8xf32> to vector<2x8x1xf32>
    %83 = tpu.reciprocal %82 {approx = true} : vector<2x8x1xf32> -> vector<2x8x1xf32>
    %84 = vector.broadcast %83 : vector<2x8x1xf32> to vector<2x8x8xf32>
    %85 = arith.mulf %80, %84 : vector<2x8x8xf32>
    %86 = arith.truncf %85 : vector<2x8x8xf32> to vector<2x8x8xbf16>
    "tpu.trace_start"() <{level = 10 : i32, message = "bqk,bkd->bqd"}> : () -> ()
    %cst_35 = arith.constant dense<0.000000e+00> : vector<2x8x8xf32>
    %87 = tpu.matmul %86, %74, %cst_35 {dimension_numbers = #tpu.dot_dimension_numbers<[2], [1], [1], [2], [0, 0, 0, 1, 1, 2], [0], [0]>} : vector<2x8x8xbf16>, vector<2x8x8xbf16>, vector<2x8x8xf32> -> vector<2x8x8xf32>
    "tpu.trace_stop"() : () -> ()
    %88 = tpu.concatenate %39, %55, %71, %87 in 2 : vector<2x8x8xf32>, vector<2x8x8xf32>, vector<2x8x8xf32>, vector<2x8x8xf32> -> vector<2x8x32xf32>
    %89 = vector.shape_cast %88 : vector<2x8x32xf32> to vector<16x32xf32>
    %90 = arith.truncf %89 : vector<16x32xf32> to vector<16x32xbf16>
    %c0_36 = arith.constant 0 : index
    %c0_37 = arith.constant 0 : index
    %91 = vector.load %arg4[%c0_36, %c0_37] : memref<32x32xbf16, #tpu.memory_space<vmem>>, vector<32x32xbf16>
    %cst_38 = arith.constant dense<0.000000e+00> : vector<16x32xf32>
    %92 = tpu.matmul %90, %91, %cst_38 {dimension_numbers = #tpu.dot_dimension_numbers<[1], [0], [0], [1], [0, 0, 1, 1], [], []>} : vector<16x32xbf16>, vector<32x32xbf16>, vector<16x32xf32> -> vector<16x32xf32>
    %93 = vector.broadcast %1 : vector<1x32xf32> to vector<16x32xf32>
    %94 = arith.addf %92, %93 : vector<16x32xf32>
    %95 = arith.addf %9, %94 : vector<16x32xf32>
    %cst_39 = arith.constant dense<0.000000e+00> : vector<16xf32>
    %96 = vector.multi_reduction <add>, %95, %cst_39 [1] : vector<16x32xf32> to vector<16xf32>
    %97 = vector.shape_cast %96 : vector<16xf32> to vector<16x1xf32>
    %cst_40 = arith.constant 3.200000e+01 : f32
    %98 = vector.broadcast %cst_40 : f32 to vector<16x1xf32>
    %99 = arith.divf %97, %98 : vector<16x1xf32>
    %100 = vector.broadcast %99 : vector<16x1xf32> to vector<16x32xf32>
    %101 = arith.subf %95, %100 : vector<16x32xf32>
    %102 = arith.mulf %101, %101 : vector<16x32xf32>
    %cst_41 = arith.constant dense<0.000000e+00> : vector<16xf32>
    %103 = vector.multi_reduction <add>, %102, %cst_41 [1] : vector<16x32xf32> to vector<16xf32>
    %104 = vector.shape_cast %103 : vector<16xf32> to vector<16x1xf32>
    %cst_42 = arith.constant 3.200000e+01 : f32
    %105 = vector.broadcast %cst_42 : f32 to vector<16x1xf32>
    %106 = arith.divf %104, %105 : vector<16x1xf32>
    %107 = vector.broadcast %99 : vector<16x1xf32> to vector<16x32xf32>
    %108 = arith.subf %95, %107 : vector<16x32xf32>
    %cst_43 = arith.constant 9.99999974E-6 : f32
    %109 = vector.broadcast %cst_43 : f32 to vector<16x1xf32>
    %110 = arith.addf %106, %109 : vector<16x1xf32>
    %111 = math.rsqrt %110 : vector<16x1xf32>
    %112 = vector.broadcast %111 : vector<16x1xf32> to vector<16x32xf32>
    %113 = arith.mulf %108, %112 : vector<16x32xf32>
    %114 = vector.broadcast %2 : vector<1x32xf32> to vector<16x32xf32>
    %115 = arith.mulf %113, %114 : vector<16x32xf32>
    %116 = vector.broadcast %3 : vector<1x32xf32> to vector<16x32xf32>
    %117 = arith.addf %115, %116 : vector<16x32xf32>
    %118 = arith.truncf %117 : vector<16x32xf32> to vector<16x32xbf16>
    %c0_44 = arith.constant 0 : index
    %c0_45 = arith.constant 0 : index
    %119 = vector.load %arg8[%c0_44, %c0_45] : memref<32x64xbf16, #tpu.memory_space<vmem>>, vector<32x64xbf16>
    %cst_46 = arith.constant dense<0.000000e+00> : vector<16x64xf32>
    %120 = tpu.matmul %118, %119, %cst_46 {dimension_numbers = #tpu.dot_dimension_numbers<[1], [0], [0], [1], [0, 0, 1, 1], [], []>} : vector<16x32xbf16>, vector<32x64xbf16>, vector<16x64xf32> -> vector<16x64xf32>
    %121 = vector.broadcast %4 : vector<1x64xf32> to vector<16x64xf32>
    %122 = arith.addf %120, %121 : vector<16x64xf32>
    %cst_47 = arith.constant 0.000000e+00 : f32
    %123 = vector.broadcast %cst_47 : f32 to vector<16x64xf32>
    %124 = arith.maximumf %122, %123 : vector<16x64xf32>
    %125 = arith.truncf %124 : vector<16x64xf32> to vector<16x64xbf16>
    %c0_48 = arith.constant 0 : index
    %c0_49 = arith.constant 0 : index
    %126 = vector.load %arg10[%c0_48, %c0_49] : memref<64x32xbf16, #tpu.memory_space<vmem>>, vector<64x32xbf16>
    %cst_50 = arith.constant dense<0.000000e+00> : vector<16x32xf32>
    %127 = tpu.matmul %125, %126, %cst_50 {dimension_numbers = #tpu.dot_dimension_numbers<[1], [0], [0], [1], [0, 0, 1, 1], [], []>} : vector<16x64xbf16>, vector<64x32xbf16>, vector<16x32xf32> -> vector<16x32xf32>
    %128 = vector.broadcast %5 : vector<1x32xf32> to vector<16x32xf32>
    %129 = arith.addf %127, %128 : vector<16x32xf32>
    %130 = arith.addf %117, %129 : vector<16x32xf32>
    %cst_51 = arith.constant dense<0.000000e+00> : vector<16xf32>
    %131 = vector.multi_reduction <add>, %130, %cst_51 [1] : vector<16x32xf32> to vector<16xf32>
    %132 = vector.shape_cast %131 : vector<16xf32> to vector<16x1xf32>
    %cst_52 = arith.constant 3.200000e+01 : f32
    %133 = vector.broadcast %cst_52 : f32 to vector<16x1xf32>
    %134 = arith.divf %132, %133 : vector<16x1xf32>
    %135 = vector.broadcast %134 : vector<16x1xf32> to vector<16x32xf32>
    %136 = arith.subf %130, %135 : vector<16x32xf32>
    %137 = arith.mulf %136, %136 : vector<16x32xf32>
    %cst_53 = arith.constant dense<0.000000e+00> : vector<16xf32>
    %138 = vector.multi_reduction <add>, %137, %cst_53 [1] : vector<16x32xf32> to vector<16xf32>
    %139 = vector.shape_cast %138 : vector<16xf32> to vector<16x1xf32>
    %cst_54 = arith.constant 3.200000e+01 : f32
    %140 = vector.broadcast %cst_54 : f32 to vector<16x1xf32>
    %141 = arith.divf %139, %140 : vector<16x1xf32>
    %142 = vector.broadcast %134 : vector<16x1xf32> to vector<16x32xf32>
    %143 = arith.subf %130, %142 : vector<16x32xf32>
    %cst_55 = arith.constant 9.99999974E-6 : f32
    %144 = vector.broadcast %cst_55 : f32 to vector<16x1xf32>
    %145 = arith.addf %141, %144 : vector<16x1xf32>
    %146 = math.rsqrt %145 : vector<16x1xf32>
    %147 = vector.broadcast %146 : vector<16x1xf32> to vector<16x32xf32>
    %148 = arith.mulf %143, %147 : vector<16x32xf32>
    %149 = vector.broadcast %6 : vector<1x32xf32> to vector<16x32xf32>
    %150 = arith.mulf %148, %149 : vector<16x32xf32>
    %151 = vector.broadcast %7 : vector<1x32xf32> to vector<16x32xf32>
    %152 = arith.addf %150, %151 : vector<16x32xf32>
    %153 = vector.shape_cast %152 : vector<16x32xf32> to vector<2x8x32xf32>
    %c0_56 = arith.constant 0 : index
    %c0_57 = arith.constant 0 : index
    %c0_58 = arith.constant 0 : index
    %154 = vector.load %arg14[%c0_56, %c0_57, %c0_58] : memref<2x8x32xf32, #tpu.memory_space<vmem>>, vector<2x8x32xf32>
    tpu.vector_store %arg14[%c0_56, %c0_57, %c0_58], %153 {strides = array<i32>} : memref<2x8x32xf32, #tpu.memory_space<vmem>>, vector<2x8x32xf32>,
    return
  }
  func.func @transform_0(%arg0: i32) -> (i32, i32, i32) {
    %c0_i32 = arith.constant 0 : i32
    %c0_i32_0 = arith.constant 0 : i32
    %c0_i32_1 = arith.constant 0 : i32
    return %arg0, %c0_i32, %c0_i32_0 : i32, i32, i32
  }
  func.func @transform_1(%arg0: i32) -> (i32, i32) {
    %c0_i32 = arith.constant 0 : i32
    %c0_i32_0 = arith.constant 0 : i32
    %c0_i32_1 = arith.constant 0 : i32
    return %c0_i32, %c0_i32_0 : i32, i32
  }
  func.func @transform_2(%arg0: i32) -> (i32, i32) {
    %c0_i32 = arith.constant 0 : i32
    %c0_i32_0 = arith.constant 0 : i32
    %c0_i32_1 = arith.constant 0 : i32
    return %c0_i32, %c0_i32_0 : i32, i32
  }
  func.func @transform_3(%arg0: i32) -> (i32, i32) {
    %c0_i32 = arith.constant 0 : i32
    %c0_i32_0 = arith.constant 0 : i32
    %c0_i32_1 = arith.constant 0 : i32
    return %c0_i32, %c0_i32_0 : i32, i32
  }
  func.func @transform_4(%arg0: i32) -> (i32, i32) {
    %c0_i32 = arith.constant 0 : i32
    %c0_i32_0 = arith.constant 0 : i32
    %c0_i32_1 = arith.constant 0 : i32
    return %c0_i32, %c0_i32_0 : i32, i32
  }
  func.func @transform_5(%arg0: i32) -> (i32, i32) {
    %c0_i32 = arith.constant 0 : i32
    %c0_i32_0 = arith.constant 0 : i32
    %c0_i32_1 = arith.constant 0 : i32
    return %c0_i32, %c0_i32_0 : i32, i32
  }
  func.func @transform_6(%arg0: i32) -> (i32, i32) {
    %c0_i32 = arith.constant 0 : i32
    %c0_i32_0 = arith.constant 0 : i32
    %c0_i32_1 = arith.constant 0 : i32
    return %c0_i32, %c0_i32_0 : i32, i32
  }
  func.func @transform_7(%arg0: i32) -> (i32, i32) {
    %c0_i32 = arith.constant 0 : i32
    %c0_i32_0 = arith.constant 0 : i32
    %c0_i32_1 = arith.constant 0 : i32
    return %c0_i32, %c0_i32_0 : i32, i32
  }
  func.func @transform_8(%arg0: i32) -> (i32, i32) {
    %c0_i32 = arith.constant 0 : i32
    %c0_i32_0 = arith.constant 0 : i32
    %c0_i32_1 = arith.constant 0 : i32
    return %c0_i32, %c0_i32_0 : i32, i32
  }
  func.func @transform_9(%arg0: i32) -> (i32, i32) {
    %c0_i32 = arith.constant 0 : i32
    %c0_i32_0 = arith.constant 0 : i32
    %c0_i32_1 = arith.constant 0 : i32
    return %c0_i32, %c0_i32_0 : i32, i32
  }
  func.func @transform_10(%arg0: i32) -> (i32, i32) {
    %c0_i32 = arith.constant 0 : i32
    %c0_i32_0 = arith.constant 0 : i32
    %c0_i32_1 = arith.constant 0 : i32
    return %c0_i32, %c0_i32_0 : i32, i32
  }
  func.func @transform_11(%arg0: i32) -> (i32, i32) {
    %c0_i32 = arith.constant 0 : i32
    %c0_i32_0 = arith.constant 0 : i32
    %c0_i32_1 = arith.constant 0 : i32
    return %c0_i32, %c0_i32_0 : i32, i32
  }
  func.func @transform_12(%arg0: i32) -> (i32, i32) {
    %c0_i32 = arith.constant 0 : i32
    %c0_i32_0 = arith.constant 0 : i32
    %c0_i32_1 = arith.constant 0 : i32
    return %c0_i32, %c0_i32_0 : i32, i32
  }
  func.func @transform_13(%arg0: i32) -> (i32, i32, i32) {
    %c0_i32 = arith.constant 0 : i32
    %c0_i32_0 = arith.constant 0 : i32
    %c0_i32_1 = arith.constant 0 : i32
    return %arg0, %c0_i32, %c0_i32_0 : i32, i32, i32
  }
}

</mosaic_0001>

<bundles_post_ra>
// kernel: tpu_custom_call.1
= control target key start
LH: loop header
LB: loop body
LE: loop exit
PB: predicated region body
PF: predicated region fallthrough
CT: control target
= control target key end

     0   :  { %18 = vsyncpa [#allocation3], 0  ;;  %s2089_s0 = inlined_call_operand.vmem [shape: f32[2,8,32], index: 0, kind: input, shape index: {}]   ;;  %s2090_s1 = inlined_call_operand.vmem [shape: bf16[32,96], index: 1, kind: input, shape index: {}]   ;;  %s2091_s2 = inlined_call_operand.vmem [shape: f32[1,96], index: 2, kind: input, shape index: {}]   ;;  %s2092_s3 = inlined_call_operand.vmem [shape: bf16[32,32], index: 3, kind: input, shape index: {}]   ;;  %s2093_s4 = inlined_call_operand.vmem [shape: f32[1,32], index: 4, kind: input, shape index: {}]   ;;  %s2094_s5 = inlined_call_operand.vmem [shape: f32[1,32], index: 5, kind: input, shape index: {}]   ;;  %s2095_s6 = inlined_call_operand.vmem [shape: f32[1,32], index: 6, kind: input, shape index: {}]   ;;  %s2096_s7 = inlined_call_operand.hbm [shape: bf16[32,64], index: 7, kind: input, shape index: {}]   ;;  %s2097_s8 = inlined_call_operand.vmem [shape: f32[1,64], index: 8, kind: input, shape index: {}]   ;;  %s2098_s9 = inlined_call_operand.vmem [shape: bf16[64,32], index: 9, kind: input, shape index: {}]   ;;  %s2099_s10 = inlined_call_operand.vmem [shape: f32[1,32], index: 10, kind: input, shape index: {}]   ;;  %s2100_s11 = inlined_call_operand.vmem [shape: f32[1,32], index: 11, kind: input, shape index: {}]   ;;  %s2101_s12 = inlined_call_operand.vmem [shape: f32[1,32], index: 12, kind: input, shape index: {}]   ;;  %s2102_s13 = inlined_call_operand.hbm [shape: f32[2,8,32], index: 13, kind: output, shape index: {}]  }
   0x1   :  { %19 = vsyncpa [#allocation4], 0  ;;  %s1735_s25 = smov [#allocation2]   ;;  %s1687_s29 = scalar_lea.hbm %s2096_s7, 256 }
   0x2   :  { %s39_s26 = sshll.u32 %s1735_s25, 4  ;;  %p1688_p0 = scmp.ne.s32.totalorder %s2096_s7, %s1687_s29  ;;  %s40_s26 = int_to_ptr.vmem [resolvable:$true] %s39_s26 }
   0x3   :  { %p1691_p1 = scmp.lt.u32.totalorder %s1687_s29, %s2096_s7 }
   0x5   :  { %p1693_p2 = pnand %p1691_p1, %p1688_p0 }
   0x7   :  { %1696 = shalt.err (!%p1693_p2)
}
   0x8   :  { %s1697_s17 = scalar_lea.vmem %s40_s26, 256  ;;  %p1702_p4 = scmp.lt.s32.totalorder %s40_s26, %s40_s26 }
   0x9   :  { %p1698_p3 = scmp.ne.s32.totalorder %s40_s26, %s1697_s17  ;;  %p1703_p5 = scmp.lt.s32.totalorder %s1697_s17, %s1697_s17 }
   0xb   :  { %p1704_p6 = por %p1703_p5, %p1702_p4 }
   0xd   :  { %p1705_p7 = pnand %p1704_p6, %p1698_p3 }
   0xf   :  { %1708 = shalt.err (!%p1705_p7)
}
  0x10   :  { %s1736_s18 = smov 64   ;;  %s1737_s19 = smov 4  }
  0x11   :  { %45 = dma.hbm_to_vmem [thread:$0]  %s2096_s7, 256, %s40_s26, [#allocation3], %s1736_s18, %s1736_s18, %s1737_s19  }
  0x12   :  { %1731 = dma.done.wait [#allocation3], 256  }
  0x13   :  { %1732 = vsyncadd [#allocation3], 4294967040  ;;  %v1738_v0 = vmov 0.0   ;;  %vm1739_vm0 = vmmov 0   ;;  %v1637_v1 = vld [vmem:[%s2090_s1] sm:$0xff]   ;;  %v1638_v2 = vld [vmem:[%s2090_s1 + $0x8] sm:$0xff]  }
  0x14   :  { %1470 = vmatprep.subr.bf16.mxu0 %v1738_v0  ;;  %1474 = vmatprep.mubr.msk.bf16.mxu0 %vm1739_vm0, %v1738_v0  ;;  %v1854_v3 = vld [vmem:[%s2089_s0] sm:$0xff]  ;;  %v1859_v4 = vld [vmem:[%s2089_s0 + $0x8] sm:$0xff]  ;;  %vm93_vm1 = vcmask 261120   ;;  %s1740_s0 = smov 96   ;;  %vm146_vm2 = vcmask 64512   ;;  %vm270_vm3 = vcmask 1043456  }
  0x15   :  { %1478 = vmatprep.subr.bf16.mxu1 %v1738_v0  ;;  %1480 = vmatprep.mubr.msk.bf16.mxu1 %vm1739_vm0, %v1738_v0  ;;  %v70_v5 = vpack.c.bf16 %v1859_v4, %v1854_v3  ;;  %v1382_v6 = vld [vmem:[%s2091_s2] ss:$0 sm:$0xff]  ;;  %s1741_s2 = smov 88   ;;  %s1742_s30 = smov 120   ;;  %vm1048_vm4 = vcmask 130048   ;;  %vm1051_vm5 = vcmask 195584  }
  0x16   :  { %1471 = vmatpush3.bf16.msra.mxu0 %v1637_v1  ;;  %s1743_s14 = smov 56   ;;  %s1744_s15 = smov 80   ;;  %vm1274_vm6 = vcmask 523264  }
  0x17   :  { %1472 = vmatprep.subr.bf16.mxu0 %v1738_v0  ;;  %s1745_s16 = smov 112   ;;  %s1746_s17 = smov 48  }
  0x18   :  { %s1748_s19 = smov 104   ;;  %s1749_s20 = smov 40  }
  0x19   :  { %s1750_s21 = smov 8   ;;  %s1751_s22 = smov 16  }
  0x1a   :  { %1473 = vmatpush3.bf16.msra.mxu0 %v1638_v2  ;;  %s1752_s26 = smov 24   ;;  %s1753_s23 = smov [#allocation5]  }
  0x1b   :  { %1484 = vmatprep.subr.bf16.mxu0 %v1738_v0  ;;  %s1370_s7 = sshll.u32 %s1753_s23, 4  ;;  %s1371_s7 = int_to_ptr.vmem [resolvable:$true] %s1370_s7 }
  0x1c   :  { %s1709_s24 = scalar_lea.vmem %s1371_s7, 256  ;;  %p1714_p9 = scmp.lt.s32.totalorder %s1371_s7, %s1371_s7 }
  0x1d   :  { %1475 = vmatmul.mubr.msk.bf16.vlgmr.msra.gmra.mrb[0].mxu0 %vm93_vm1, %v70_v5  ;;  %p1710_p8 = scmp.ne.s32.totalorder %s1371_s7, %s1709_s24  ;;  %p1715_p10 = scmp.lt.s32.totalorder %s1709_s24, %s1709_s24 }
  0x1e   :  { %1486 = vmatprep.mubr.msk.bf16.mxu0 %vm1739_vm0, %v1738_v0 }
  0x1f   :  { %p1716_p11 = por %p1715_p10, %p1714_p9 }
  0x21   :  { %p1717_p12 = pnand %p1716_p11, %p1710_p8 }
  0xf0   :  { %v131_v7 = vpop.f32.mrb[0].mxu0 }
  0xf1   :  { %v132_v8 = vadd.f32 %v1382_v6, %v131_v7  ;;  %v1476_v9 = vpop.f32.mrb[1].mxu0 }
  0xf2   :  { %v134_v10 = vpop.f32.mrb[2].mxu0 }
  0xf3   :  { %v1871_v11 = vpack.c.bf16 %v132_v8, %v132_v8  ;;  %v135_v12 = vadd.f32 %v1382_v6, %v134_v10  ;;  %v1477_v13 = vpop.f32.mrb[3].mxu0 }
  0xf5   :  { %144 = vrot.lane.b32.xlu0 %v1871_v11, %s1740_s0  ;;  %v1874_v14 = vpack.c.bf16 %v135_v12, %v135_v12 }
  0xf9   :  { %193 = vrot.lane.b32.xlu0 %v1874_v14, %s1740_s0 }
 0x167   :  { %v145_v15 = vpop.permute.xlu0 %144 }
 0x168   :  { %v151_v16 = vsel %vm146_vm2, %v145_v15, 0 }
 0x169   :  { %1479 = vmatpush3.bf16.xpose.msra.mxu1 %v151_v16 }
 0x16a   :  { %1490 = vmatprep.subr.bf16.mxu1 %v1738_v0 }
 0x16b   :  { %v194_v17 = vpop.permute.xlu0 %193 }
 0x16c   :  { %v199_v18 = vsel %vm146_vm2, %v194_v17, 0 }
 0x16d   :  { %1485 = vmatpush3.bf16.xpose.msra.mxu0 %v199_v18 }
 0x16e   :  { %1496 = vmatprep.subr.bf16.mxu0 %v1738_v0 }
 0x170   :  { %1481 = vmatmul.mubr.msk.bf16.vlgmr.msra.gmra.mrb[0].mxu1 %vm146_vm2, %v1871_v11 }
 0x171   :  { %1492 = vmatprep.mubr.msk.bf16.mxu1 %vm1739_vm0, %v1738_v0 }
 0x174   :  { %1487 = vmatmul.mubr.msk.bf16.vlgmr.msra.gmra.mrb[4].mxu0 %vm146_vm2, %v1874_v14 }
 0x175   :  { %1498 = vmatprep.mubr.msk.bf16.mxu0 %vm1739_vm0, %v1738_v0 }
 0x243   :  { %v187_v19 = vpop.f32.mrb[0].mxu1 }
 0x244   :  { %v1482_v20 = vpop.f32.mrb[1].mxu1  ;;  %v241_v21 = vsel %vm146_vm2, %v187_v19, -inf }
 0x245   :  { %242 = vmax.xlane.f32.xlu1 %v241_v21  ;;  %v190_v22 = vpop.f32.mrb[2].mxu1 }
 0x246   :  { %v1483_v23 = vpop.f32.mrb[3].mxu1 }
 0x247   :  { %v235_v24 = vpop.f32.mrb[4].mxu0 }
 0x248   :  { %v1488_v25 = vpop.f32.mrb[5].mxu0  ;;  %v244_v26 = vsel %vm146_vm2, %v235_v24, -inf }
 0x249   :  { %245 = vmax.xlane.f32.xlu1 %v244_v26  ;;  %v238_v27 = vpop.f32.mrb[6].mxu0 }
 0x24a   :  { %v1489_v28 = vpop.f32.mrb[7].mxu0 }
 0x25a   :  { %265 = vrot.lane.b32.xlu1 %v1871_v11, %s1736_s18 }
 0x25e   :  { %314 = vrot.lane.b32.xlu1 %v1874_v14, %s1736_s18  ;;  %s1747_s18 = smov 72  }
 0x262   :  { %364 = vrot.lane.b32.xlu1 %v1871_v11, %s1741_s2 }
 0x2d2   :  { %v243_v29 = vpop.xlane.xlu1 %242 }
 0x2d3   :  { %v247_v30 = vsub.f32 %v187_v19, %v243_v29 }
 0x2d5   :  { %v249_v31 = vmul.f32 1.442695, %v247_v30 }
 0x2d6   :  { %v246_v32 = vpop.xlane.xlu1 %245 }
 0x2d7   :  { %1647 = vpow2.f32 %v249_v31  ;;  %v248_v33 = vsub.f32 %v235_v24, %v246_v32 }
 0x2d9   :  { %v251_v34 = vmul.f32 1.442695, %v248_v33 }
 0x2da   :  { %v266_v35 = vpop.permute.xlu1 %265 }
 0x2db   :  { %1649 = vpow2.f32 %v251_v34  ;;  %v272_v36 = vsel %vm270_vm3, %v266_v35, 0 }
 0x2dc   :  { %1491 = vmatpush3.bf16.msra.mxu1 %v272_v36 }
 0x2dd   :  { %1502 = vmatprep.subr.bf16.mxu1 %v1738_v0 }
 0x2de   :  { %v315_v37 = vpop.permute.xlu1 %314 }
 0x2df   :  { %v320_v38 = vsel %vm270_vm3, %v315_v37, 0 }
 0x2e0   :  { %1497 = vmatpush3.bf16.msra.mxu0 %v320_v38 }
 0x2e1   :  { %v1648_v39 = vpop.eup %1647  ;;  %1508 = vmatprep.subr.bf16.mxu0 %v1738_v0 }
 0x2e2   :  { %v253_v40 = vsel %vm146_vm2, %v1648_v39, 0.0  ;;  %v365_v43 = vpop.permute.xlu1 %364 }
 0x2e3   :  { %254 = vadd.xlane.f32.xlu0 %v253_v40  ;;  %v370_v50 = vsel %vm146_vm2, %v365_v43, 0 }
 0x2e5   :  { %v1650_v41 = vpop.eup %1649 }
 0x2e6   :  { %v256_v42 = vsel %vm146_vm2, %v1650_v41, 0.0 }
 0x2e7   :  { %257 = vadd.xlane.f32.xlu1 %v256_v42 }
 0x2f8   :  { %414 = vrot.lane.b32.xlu1 %v1874_v14, %s1741_s2 }
 0x2f9   :  { %362 = vrot.lane.b32.xlu0 %v1871_v11, %s1742_s30 }
 0x2fc   :  { %412 = vrot.lane.b32.xlu1 %v1874_v14, %s1742_s30 }
 0x370   :  { %v255_v44 = vpop.xlane.xlu0 %254 }
 0x371   :  { %1651 = vrcp.f32 %v255_v44 }
 0x374   :  { %v258_v45 = vpop.xlane.xlu1 %257  ;;  %v363_v55 = vpop.permute.xlu0 %362 }
 0x375   :  { %1653 = vrcp.f32 %v258_v45 }
 0x378   :  { %v415_v52 = vpop.permute.xlu1 %414 }
 0x379   :  { %v420_v54 = vsel %vm146_vm2, %v415_v52, 0 }
 0x37b   :  { %v1652_v46 = vpop.eup %1651 }
 0x37c   :  { %v261_v47 = vmul.f32 %v1652_v46, %v1648_v39  ;;  %v413_v56 = vpop.permute.xlu1 %412 }
 0x37e   :  { %v263_v48 = vpack.c.bf16 %v261_v47, %v261_v47 }
 0x37f   :  { %v1654_v49 = vpop.eup %1653 }
 0x380   :  { %v262_v51 = vmul.f32 %v1654_v49, %v1650_v41  ;;  %1493 = vmatmul.mubr.msk.bf16.vlgmr.msra.gmra.mrb[4].mxu1 %vm146_vm2, %v263_v48 }
 0x381   :  { %1503 = vmatpush3.bf16.xpose.msra.mxu1 %v370_v50  ;;  %1504 = vmatprep.mubr.msk.bf16.mxu1 %vm1739_vm0, %v1738_v0 }
 0x382   :  { %v264_v53 = vpack.c.bf16 %v262_v51, %v262_v51  ;;  %1514 = vmatprep.subr.bf16.mxu1 %v1738_v0 }
 0x384   :  { %1499 = vmatmul.mubr.msk.bf16.vlgmr.msra.gmra.mrb[8].mxu0 %vm146_vm2, %v264_v53 }
 0x385   :  { %1509 = vmatpush3.bf16.xpose.msra.mxu0 %v420_v54  ;;  %1510 = vmatprep.mubr.msk.bf16.mxu0 %vm1739_vm0, %v1738_v0 }
 0x386   :  { %1520 = vmatprep.subr.bf16.mxu0 %v1738_v0 }
 0x388   :  { %1505 = vmatmul.mubr.msk.bf16.vlgmr.msra.gmra.mrb[8].mxu1 %vm146_vm2, %v363_v55 }
 0x389   :  { %1516 = vmatprep.mubr.msk.bf16.mxu1 %vm1739_vm0, %v1738_v0 }
 0x38c   :  { %1511 = vmatmul.mubr.msk.bf16.vlgmr.msra.gmra.mrb[12].mxu0 %vm146_vm2, %v413_v56 }
 0x38d   :  { %1522 = vmatprep.mubr.msk.bf16.mxu0 %vm1739_vm0, %v1738_v0 }
 0x453   :  { %v1921_v57 = vpop.f32.mrb[4].mxu1 }
 0x454   :  { %v1494_v58 = vpop.f32.mrb[5].mxu1 }
 0x455   :  { %v311_v59 = vpop.f32.mrb[6].mxu1 }
 0x456   :  { %v1495_v60 = vpop.f32.mrb[7].mxu1 }
 0x457   :  { %v1923_v61 = vpop.f32.mrb[8].mxu0 }
 0x458   :  { %v1500_v62 = vpop.f32.mrb[9].mxu0 }
 0x459   :  { %v359_v63 = vpop.f32.mrb[10].mxu0 }
 0x45a   :  { %v1501_v1 = vpop.f32.mrb[11].mxu0 }
 0x45b   :  { %v406_v2 = vpop.f32.mrb[8].mxu1 }
 0x45c   :  { %v1506_v5 = vpop.f32.mrb[9].mxu1  ;;  %v462_v6 = vsel %vm146_vm2, %v406_v2, -inf }
 0x45d   :  { %463 = vmax.xlane.f32.xlu1 %v462_v6  ;;  %v409_v7 = vpop.f32.mrb[10].mxu1 }
 0x45e   :  { %v1507_v8 = vpop.f32.mrb[11].mxu1 }
 0x45f   :  { %v456_v9 = vpop.f32.mrb[12].mxu0 }
 0x460   :  { %v1512_v10 = vpop.f32.mrb[13].mxu0  ;;  %v465_v12 = vsel %vm146_vm2, %v456_v9, -inf }
 0x461   :  { %466 = vmax.xlane.f32.xlu0 %v465_v12  ;;  %v459_v13 = vpop.f32.mrb[14].mxu0 }
 0x462   :  { %v1513_v15 = vpop.f32.mrb[15].mxu0 }
 0x46e   :  { %486 = vrot.lane.b32.xlu1 %v1871_v11, %s1743_s14 }
 0x472   :  { %584 = vrot.lane.b32.xlu1 %v1871_v11, %s1744_s15 }
 0x477   :  { %534 = vrot.lane.b32.xlu0 %v1874_v14, %s1743_s14 }
 0x47b   :  { %582 = vrot.lane.b32.xlu0 %v1871_v11, %s1745_s16 }
 0x4ea   :  { %v464_v16 = vpop.xlane.xlu1 %463 }
 0x4eb   :  { %v468_v17 = vsub.f32 %v406_v2, %v464_v16 }
 0x4ed   :  { %v470_v18 = vmul.f32 1.442695, %v468_v17 }
 0x4ee   :  { %v487_v19 = vpop.permute.xlu1 %486  ;;  %v467_v20 = vpop.xlane.xlu0 %466 }
 0x4ef   :  { %1655 = vpow2.f32 %v470_v18  ;;  %v492_v21 = vsel %vm270_vm3, %v487_v19, 0  ;;  %v469_v22 = vsub.f32 %v456_v9, %v467_v20 }
 0x4f0   :  { %1515 = vmatpush3.bf16.msra.mxu1 %v492_v21 }
 0x4f1   :  { %v472_v23 = vmul.f32 1.442695, %v469_v22  ;;  %1526 = vmatprep.subr.bf16.mxu1 %v1738_v0 }
 0x4f2   :  { %v535_v24 = vpop.permute.xlu0 %534  ;;  %v585_v30 = vpop.permute.xlu1 %584 }
 0x4f3   :  { %1657 = vpow2.f32 %v472_v23  ;;  %v540_v25 = vsel %vm270_vm3, %v535_v24, 0  ;;  %v590_v37 = vsel %vm146_vm2, %v585_v30, 0 }
 0x4f4   :  { %1521 = vmatpush3.bf16.msra.mxu0 %v540_v25 }
 0x4f5   :  { %1532 = vmatprep.subr.bf16.mxu0 %v1738_v0 }
 0x4f6   :  { %v583_v42 = vpop.permute.xlu0 %582 }
 0x4f9   :  { %v1656_v26 = vpop.eup %1655 }
 0x4fa   :  { %v474_v27 = vsel %vm146_vm2, %v1656_v26, 0.0 }
 0x4fb   :  { %475 = vadd.xlane.f32.xlu1 %v474_v27 }
 0x4fd   :  { %v1658_v28 = vpop.eup %1657 }
 0x4fe   :  { %v477_v29 = vsel %vm146_vm2, %v1658_v28, 0.0 }
 0x4ff   :  { %478 = vadd.xlane.f32.xlu1 %v477_v29 }
 0x510   :  { %634 = vrot.lane.b32.xlu1 %v1874_v14, %s1744_s15 }
 0x514   :  { %632 = vrot.lane.b32.xlu1 %v1874_v14, %s1745_s16 }
 0x588   :  { %v476_v31 = vpop.xlane.xlu1 %475 }
 0x589   :  { %1659 = vrcp.f32 %v476_v31 }
 0x58c   :  { %v479_v32 = vpop.xlane.xlu1 %478 }
 0x58d   :  { %1661 = vrcp.f32 %v479_v32 }
 0x590   :  { %v635_v39 = vpop.permute.xlu1 %634 }
 0x591   :  { %v640_v41 = vsel %vm146_vm2, %v635_v39, 0 }
 0x593   :  { %v1660_v33 = vpop.eup %1659 }
 0x594   :  { %v482_v34 = vmul.f32 %v1660_v33, %v1656_v26  ;;  %v633_v43 = vpop.permute.xlu1 %632 }
 0x596   :  { %v484_v35 = vpack.c.bf16 %v482_v34, %v482_v34 }
 0x597   :  { %v1662_v36 = vpop.eup %1661 }
 0x598   :  { %v483_v38 = vmul.f32 %v1662_v36, %v1658_v28  ;;  %1517 = vmatmul.mubr.msk.bf16.vlgmr.msra.gmra.mrb[12].mxu1 %vm146_vm2, %v484_v35 }
 0x599   :  { %1527 = vmatpush3.bf16.xpose.msra.mxu1 %v590_v37  ;;  %1528 = vmatprep.mubr.msk.bf16.mxu1 %vm1739_vm0, %v1738_v0 }
 0x59a   :  { %v485_v40 = vpack.c.bf16 %v483_v38, %v483_v38  ;;  %1538 = vmatprep.subr.bf16.mxu1 %v1738_v0 }
 0x59c   :  { %1523 = vmatmul.mubr.msk.bf16.vlgmr.msra.gmra.mrb[16].mxu0 %vm146_vm2, %v485_v40 }
 0x59d   :  { %1533 = vmatpush3.bf16.xpose.msra.mxu0 %v640_v41  ;;  %1534 = vmatprep.mubr.msk.bf16.mxu0 %vm1739_vm0, %v1738_v0 }
 0x59e   :  { %1544 = vmatprep.subr.bf16.mxu0 %v1738_v0 }
 0x5a0   :  { %1529 = vmatmul.mubr.msk.bf16.vlgmr.msra.gmra.mrb[16].mxu1 %vm146_vm2, %v583_v42 }
 0x5a1   :  { %1540 = vmatprep.mubr.msk.bf16.mxu1 %vm1739_vm0, %v1738_v0 }
 0x5a4   :  { %1535 = vmatmul.mubr.msk.bf16.vlgmr.msra.gmra.mrb[20].mxu0 %vm146_vm2, %v633_v43 }
 0x5a5   :  { %1546 = vmatprep.mubr.msk.bf16.mxu0 %vm1739_vm0, %v1738_v0 }
 0x66b   :  { %v1955_v44 = vpop.f32.mrb[12].mxu1 }
 0x66c   :  { %v1518_v45 = vpop.f32.mrb[13].mxu1 }
 0x66d   :  { %v531_v46 = vpop.f32.mrb[14].mxu1 }
 0x66e   :  { %v1519_v47 = vpop.f32.mrb[15].mxu1 }
 0x66f   :  { %v1957_v48 = vpop.f32.mrb[16].mxu0 }
 0x670   :  { %v1622_v49 = vpack.i.bf16 %v1957_v48, %v1955_v44  ;;  %v1524_v50 = vpop.f32.mrb[17].mxu0 }
 0x671   :  { %v579_v51 = vpop.f32.mrb[18].mxu0 }
 0x672   :  { %v1525_v52 = vpop.f32.mrb[19].mxu0 }
 0x673   :  { %v626_v53 = vpop.f32.mrb[16].mxu1 }
 0x674   :  { %v1530_v54 = vpop.f32.mrb[17].mxu1  ;;  %v682_v55 = vsel %vm146_vm2, %v626_v53, -inf }
 0x675   :  { %683 = vmax.xlane.f32.xlu0 %v682_v55  ;;  %v629_v56 = vpop.f32.mrb[18].mxu1 }
 0x676   :  { %v1531_v58 = vpop.f32.mrb[19].mxu1 }
 0x677   :  { %v676_v59 = vpop.f32.mrb[20].mxu0 }
 0x678   :  { %v1536_v60 = vpop.f32.mrb[21].mxu0  ;;  %v685_v62 = vsel %vm146_vm2, %v676_v59, -inf }
 0x679   :  { %686 = vmax.xlane.f32.xlu1 %v685_v62  ;;  %v679_v63 = vpop.f32.mrb[22].mxu0 }
 0x67a   :  { %v1537_v1 = vpop.f32.mrb[23].mxu0 }
 0x68a   :  { %706 = vrot.lane.b32.xlu1 %v1871_v11, %s1746_s17 }
 0x68e   :  { %804 = vrot.lane.b32.xlu1 %v1871_v11, %s1747_s18 }
 0x692   :  { %854 = vrot.lane.b32.xlu1 %v1874_v14, %s1747_s18 }
 0x696   :  { %852 = vrot.lane.b32.xlu1 %v1874_v14, %s1748_s19 }
 0x702   :  { %v684_v2 = vpop.xlane.xlu0 %683 }
 0x703   :  { %v688_v5 = vsub.f32 %v626_v53, %v684_v2 }
 0x705   :  { %v690_v6 = vmul.f32 1.442695, %v688_v5 }
 0x706   :  { %v687_v7 = vpop.xlane.xlu1 %686 }
 0x707   :  { %1663 = vpow2.f32 %v690_v6  ;;  %v689_v8 = vsub.f32 %v676_v59, %v687_v7 }
 0x709   :  { %v692_v9 = vmul.f32 1.442695, %v689_v8 }
 0x70a   :  { %v707_v10 = vpop.permute.xlu1 %706 }
 0x70b   :  { %1665 = vpow2.f32 %v692_v9  ;;  %v712_v12 = vsel %vm270_vm3, %v707_v10, 0 }
 0x70c   :  { %1539 = vmatpush3.bf16.msra.mxu1 %v712_v12 }
 0x70d   :  { %1550 = vmatprep.subr.bf16.mxu1 %v1738_v0 }
 0x70e   :  { %v805_v23 = vpop.permute.xlu1 %804 }
 0x70f   :  { %v810_v27 = vsel %vm146_vm2, %v805_v23, 0 }
 0x711   :  { %v1664_v13 = vpop.eup %1663 }
 0x712   :  { %v694_v15 = vsel %vm146_vm2, %v1664_v13, 0.0  ;;  %v855_v29 = vpop.permute.xlu1 %854 }
 0x713   :  { %695 = vadd.xlane.f32.xlu0 %v694_v15  ;;  %v860_v31 = vsel %vm146_vm2, %v855_v29, 0 }
 0x715   :  { %v1666_v16 = vpop.eup %1665 }
 0x716   :  { %v697_v17 = vsel %vm146_vm2, %v1666_v16, 0.0  ;;  %v853_v33 = vpop.permute.xlu1 %852 }
 0x717   :  { %698 = vadd.xlane.f32.xlu0 %v697_v17  ;;  %v1640_v17 = vld [vmem:[%s2092_s3 + $0x8] sm:$0xff]  }
 0x72d   :  { %754 = vrot.lane.b32.xlu0 %v1874_v14, %s1746_s17 }
 0x731   :  { %802 = vrot.lane.b32.xlu0 %v1871_v11, %s1748_s19 }
 0x7a0   :  { %v696_v18 = vpop.xlane.xlu0 %695 }
 0x7a1   :  { %1667 = vrcp.f32 %v696_v18 }
 0x7a4   :  { %v699_v19 = vpop.xlane.xlu0 %698 }
 0x7a5   :  { %1669 = vrcp.f32 %v699_v19 }
 0x7a8   :  { %v755_v20 = vpop.permute.xlu0 %754 }
 0x7a9   :  { %v760_v21 = vsel %vm270_vm3, %v755_v20, 0 }
 0x7aa   :  { %1545 = vmatpush3.bf16.msra.mxu0 %v760_v21 }
 0x7ab   :  { %v1668_v22 = vpop.eup %1667  ;;  %1556 = vmatprep.subr.bf16.mxu0 %v1738_v0 }
 0x7ac   :  { %v702_v24 = vmul.f32 %v1668_v22, %v1664_v13  ;;  %v803_v32 = vpop.permute.xlu0 %802 }
 0x7ae   :  { %v704_v25 = vpack.c.bf16 %v702_v24, %v702_v24 }
 0x7af   :  { %v1670_v26 = vpop.eup %1669 }
 0x7b0   :  { %v703_v28 = vmul.f32 %v1670_v26, %v1666_v16  ;;  %1541 = vmatmul.mubr.msk.bf16.vlgmr.msra.gmra.mrb[20].mxu1 %vm146_vm2, %v704_v25  ;;  %v1639_v16 = vld [vmem:[%s2092_s3] sm:$0xff]  }
 0x7b1   :  { %1551 = vmatpush3.bf16.xpose.msra.mxu1 %v810_v27  ;;  %1552 = vmatprep.mubr.msk.bf16.mxu1 %vm1739_vm0, %v1738_v0 }
 0x7b2   :  { %v705_v30 = vpack.c.bf16 %v703_v28, %v703_v28  ;;  %1562 = vmatprep.subr.bf16.mxu1 %v1738_v0 }
 0x7b4   :  { %1547 = vmatmul.mubr.msk.bf16.vlgmr.msra.gmra.mrb[24].mxu0 %vm146_vm2, %v705_v30 }
 0x7b5   :  { %1557 = vmatpush3.bf16.xpose.msra.mxu0 %v860_v31  ;;  %1558 = vmatprep.mubr.msk.bf16.mxu0 %vm1739_vm0, %v1738_v0 }
 0x7b6   :  { %1568 = vmatprep.subr.bf16.mxu0 %v1738_v0 }
 0x7b8   :  { %1553 = vmatmul.mubr.msk.bf16.vlgmr.msra.gmra.mrb[24].mxu1 %vm146_vm2, %v803_v32 }
 0x7b9   :  { %1564 = vmatprep.mubr.msk.bf16.mxu1 %vm1739_vm0, %v1738_v0 }
 0x7bc   :  { %1559 = vmatmul.mubr.msk.bf16.vlgmr.msra.gmra.mrb[28].mxu0 %vm146_vm2, %v853_v33 }
 0x7bd   :  { %1570 = vmatprep.mubr.msk.bf16.mxu0 %vm1739_vm0, %v1738_v0 }
 0x883   :  { %v748_v34 = vpop.f32.mrb[20].mxu1 }
 0x884   :  { %v1542_v35 = vpop.f32.mrb[21].mxu1 }
 0x885   :  { %v751_v36 = vpop.f32.mrb[22].mxu1 }
 0x886   :  { %v1543_v37 = vpop.f32.mrb[23].mxu1 }
 0x887   :  { %v796_v38 = vpop.f32.mrb[24].mxu0 }
 0x888   :  { %v1627_v39 = vpack.i.bf16 %v796_v38, %v748_v34  ;;  %v1548_v40 = vpop.f32.mrb[25].mxu0 }
 0x889   :  { %v799_v41 = vpop.f32.mrb[26].mxu0 }
 0x88a   :  { %v1549_v42 = vpop.f32.mrb[27].mxu0 }
 0x88b   :  { %v846_v43 = vpop.f32.mrb[24].mxu1 }
 0x88c   :  { %v1554_v45 = vpop.f32.mrb[25].mxu1  ;;  %v902_v46 = vsel %vm146_vm2, %v846_v43, -inf }
 0x88d   :  { %903 = vmax.xlane.f32.xlu0 %v902_v46  ;;  %v849_v47 = vpop.f32.mrb[26].mxu1 }
 0x88e   :  { %v1555_v50 = vpop.f32.mrb[27].mxu1 }
 0x88f   :  { %v896_v51 = vpop.f32.mrb[28].mxu0 }
 0x890   :  { %v1560_v52 = vpop.f32.mrb[29].mxu0  ;;  %v905_v53 = vsel %vm146_vm2, %v896_v51, -inf }
 0x891   :  { %906 = vmax.xlane.f32.xlu1 %v905_v53  ;;  %v899_v54 = vpop.f32.mrb[30].mxu0 }
 0x892   :  { %v1561_v55 = vpop.f32.mrb[31].mxu0 }
 0x8a2   :  { %926 = vrot.lane.b32.xlu1 %v1871_v11, %s1749_s20 }
 0x8a6   :  { %1623 = vrot.lane.b32.xlu1 %v1622_v49, %s1750_s21 }
 0x8aa   :  { %1628 = vrot.lane.b32.xlu1 %v1627_v39, %s1751_s22 }
 0x91a   :  { %v904_v56 = vpop.xlane.xlu0 %903 }
 0x91b   :  { %v908_v58 = vsub.f32 %v846_v43, %v904_v56  ;;  %v1404_v43 = vld [vmem:[%s2093_s4] ss:$0 sm:$0xff] }
 0x91d   :  { %v910_v59 = vmul.f32 1.442695, %v908_v58 }
 0x91e   :  { %v907_v60 = vpop.xlane.xlu1 %906 }
 0x91f   :  { %1671 = vpow2.f32 %v910_v59  ;;  %v909_v62 = vsub.f32 %v896_v51, %v907_v60 }
 0x921   :  { %v912_v63 = vmul.f32 1.442695, %v909_v62 }
 0x922   :  { %v927_v1 = vpop.permute.xlu1 %926 }
 0x923   :  { %1673 = vpow2.f32 %v912_v63  ;;  %v932_v2 = vsel %vm270_vm3, %v927_v1, 0 }
 0x924   :  { %1563 = vmatpush3.bf16.msra.mxu1 %v932_v2 }
 0x925   :  { %1574 = vmatprep.subr.bf16.mxu1 %v1738_v0 }
 0x926   :  { %v1624_v27 = vpop.permute.xlu1 %1623 }
 0x927   :  { %v1626_v29 = vunpack.i.h.bf16 %v1624_v27  ;;  %v1625_v30 = vunpack.i.l.bf16 %v1624_v27 }
 0x929   :  { %v1672_v11 = vpop.eup %1671  ;;  %v1047_v34 = vsel %vm146_vm2, %v1923_v61, %v1626_v29  ;;  %v1046_v35 = vsel %vm146_vm2, %v1921_v57, %v1625_v30 }
 0x92a   :  { %v914_v44 = vsel %vm146_vm2, %v1672_v11, 0.0  ;;  %v1629_v28 = vpop.permute.xlu1 %1628 }
 0x92b   :  { %915 = vadd.xlane.f32.xlu0 %v914_v44  ;;  %v1631_v31 = vunpack.i.h.bf16 %v1629_v28  ;;  %v1630_v32 = vunpack.i.l.bf16 %v1629_v28  ;;  %v1643_v44 = vld [vmem:[%s2098_s9] sm:$0xff]  }
 0x92d   :  { %v1674_v48 = vpop.eup %1673  ;;  %v1050_v38 = vsel %vm1048_vm4, %v1047_v34, %v1631_v31  ;;  %v1049_v39 = vsel %vm1048_vm4, %v1046_v35, %v1630_v32 }
 0x92e   :  { %v917_v49 = vsel %vm146_vm2, %v1674_v48, 0.0 }
 0x92f   :  { %918 = vadd.xlane.f32.xlu0 %v917_v49 }
 0x945   :  { %974 = vrot.lane.b32.xlu0 %v1874_v14, %s1749_s20 }
 0x9b8   :  { %v916_v5 = vpop.xlane.xlu0 %915 }
 0x9b9   :  { %1675 = vrcp.f32 %v916_v5 }
 0x9bc   :  { %v919_v6 = vpop.xlane.xlu0 %918 }
 0x9bd   :  { %1677 = vrcp.f32 %v919_v6 }
 0x9c0   :  { %v975_v7 = vpop.permute.xlu0 %974 }
 0x9c1   :  { %v980_v8 = vsel %vm270_vm3, %v975_v7, 0 }
 0x9c2   :  { %1569 = vmatpush3.bf16.msra.mxu0 %v980_v8 }
 0x9c3   :  { %v1676_v9 = vpop.eup %1675  ;;  %1582 = vmatprep.subr.bf16.mxu0 %v1738_v0 }
 0x9c4   :  { %v922_v10 = vmul.f32 %v1676_v9, %v1672_v11  ;;  %v1641_v11 = vld [vmem:[#allocation2] sm:$0xff]  }
 0x9c6   :  { %v924_v12 = vpack.c.bf16 %v922_v10, %v922_v10 }
 0x9c7   :  { %v1678_v13 = vpop.eup %1677 }
 0x9c8   :  { %v923_v15 = vmul.f32 %v1678_v13, %v1674_v48  ;;  %1565 = vmatmul.mubr.msk.bf16.vlgmr.msra.gmra.mrb[28].mxu1 %vm146_vm2, %v924_v12  ;;  %v1644_v48 = vld [vmem:[%s2098_s9 + $0x8] sm:$0xff]   ;;  %v1408_v12 = vld [vmem:[%s2094_s5] ss:$0 sm:$0xff] }
 0x9c9   :  { %1578 = vmatprep.mubr.msk.bf16.mxu1 %vm1739_vm0, %v1738_v0  ;;  %1575 = vmatpush3.bf16.msra.mxu1 %v1639_v16 }
 0x9ca   :  { %v925_v14 = vpack.c.bf16 %v923_v15, %v923_v15  ;;  %1576 = vmatprep.subr.bf16.mxu1 %v1738_v0 }
 0x9cc   :  { %1571 = vmatmul.mubr.msk.bf16.vlgmr.msra.gmra.mrb[32].mxu0 %vm146_vm2, %v925_v14 }
 0x9cd   :  { %1586 = vmatprep.mubr.msk.bf16.mxu0 %vm1739_vm0, %v1738_v0  ;;  %1577 = vmatpush3.bf16.msra.mxu1 %v1640_v17  ;;  %v1409_v17 = vld [vmem:[%s2095_s6] ss:$0 sm:$0xff] }
 0x9ce   :  { %1590 = vmatprep.subr.bf16.mxu1 %v1738_v0  ;;  %1583 = vmatpush3.bf16.msra.mxu0 %v1641_v11  ;;  %v1421_v11 = vld [vmem:[%s2101_s12] ss:$0 sm:$0xff] }
 0x9cf   :  { %1584 = vmatprep.subr.bf16.mxu0 %v1738_v0 }
 0xa9b   :  { %v968_v18 = vpop.f32.mrb[28].mxu1 }
 0xa9c   :  { %v1566_v19 = vpop.f32.mrb[29].mxu1 }
 0xa9d   :  { %v971_v20 = vpop.f32.mrb[30].mxu1 }
 0xa9e   :  { %v1567_v21 = vpop.f32.mrb[31].mxu1 }
 0xa9f   :  { %v1016_v22 = vpop.f32.mrb[32].mxu0 }
 0xaa0   :  { %v1632_v23 = vpack.i.bf16 %v1016_v22, %v968_v18  ;;  %v1572_v24 = vpop.f32.mrb[33].mxu0  ;;  %v1645_v22 = vld [vmem:[%s2098_s9 + $0x10] sm:$0xff]  }
 0xaa1   :  { %v1019_v25 = vpop.f32.mrb[34].mxu0  ;;  %v1410_v24 = vld [vmem:[%s2097_s8] ss:$0 sm:$0xff] }
 0xaa2   :  { %v1573_v26 = vpop.f32.mrb[35].mxu0  ;;  %1633 = vrot.lane.b32.xlu0 %v1632_v23, %s1752_s26  ;;  %v1646_v23 = vld [vmem:[%s2098_s9 + $0x18] sm:$0xff]  }
 0xb14   :  { %v1634_v33 = vpop.permute.xlu0 %1633 }
 0xb15   :  { %v1636_v36 = vunpack.i.h.bf16 %v1634_v33  ;;  %v1635_v37 = vunpack.i.l.bf16 %v1634_v33 }
 0xb17   :  { %v1053_v40 = vsel %vm1051_vm5, %v1050_v38, %v1636_v36  ;;  %v1052_v41 = vsel %vm1051_vm5, %v1049_v39, %v1635_v37 }
 0xb18   :  { %v1054_v42 = vpack.c.bf16 %v1053_v40, %v1052_v41 }
 0xb1a   :  { %1579 = vmatmul.mubr.msk.bf16.vlgmr.msra.gmra.mrb[32].mxu1 %vm93_vm1, %v1054_v42 }
 0xb1b   :  { %1598 = vmatprep.mubr.msk.bf16.mxu1 %vm1739_vm0, %v1738_v0  ;;  %1591 = vmatpush3.bf16.msra.mxu1 %v1643_v44 }
 0xb1c   :  { %1592 = vmatprep.subr.bf16.mxu1 %v1738_v0 }
 0xb1f   :  { %1593 = vmatpush3.bf16.msra.mxu1 %v1644_v48 }
 0xb20   :  { %1594 = vmatprep.subr.bf16.mxu1 %v1738_v0 }
 0xb23   :  { %1595 = vmatpush3.bf16.msra.mxu1 %v1645_v22 }
 0xb24   :  { %1596 = vmatprep.subr.bf16.mxu1 %v1738_v0  ;;  %v1414_v0 = vld [vmem:[%s2099_s10] ss:$0 sm:$0xff] }
 0xb27   :  { %1597 = vmatpush3.bf16.msra.mxu1 %v1646_v23 }
 0xbed   :  { %v1114_v61 = vpop.f32.mrb[32].mxu1 }
 0xbee   :  { %v1115_v45 = vadd.f32 %v1404_v43, %v1114_v61  ;;  %v1580_v46 = vpop.f32.mrb[33].mxu1 }
 0xbef   :  { %v1117_v57 = vpop.f32.mrb[34].mxu1 }
 0xbf0   :  { %v1118_v47 = vadd.f32 %v1404_v43, %v1117_v57  ;;  %v1581_v50 = vpop.f32.mrb[35].mxu1  ;;  %v1121_v51 = vadd.f32 %v1115_v45, %v1854_v3 }
 0xbf2   :  { %v1123_v52 = vsel %vm93_vm1, %v1121_v51, 0.0  ;;  %v1122_v53 = vadd.f32 %v1118_v47, %v1859_v4  ;;  %v1642_v4 = vld [vmem:[#allocation2 + $0x8] sm:$0xff]  }
 0xbf3   :  { %1124 = vadd.xlane.f32.xlu1 %v1123_v52  ;;  %1585 = vmatpush3.bf16.msra.mxu0 %v1642_v4 }
 0xbf4   :  { %v1126_v54 = vsel %vm93_vm1, %v1122_v53, 0.0 }
 0xbf5   :  { %1127 = vadd.xlane.f32.xlu0 %v1126_v54 }
 0xc80   :  { %v1125_v55 = vpop.xlane.xlu1 %1124 }
 0xc81   :  { %v1130_v56 = vmul.f32 0.03125, %v1125_v55 }
 0xc82   :  { %v1128_v58 = vpop.xlane.xlu0 %1127 }
 0xc83   :  { %v1132_v59 = vsub.f32 %v1121_v51, %v1130_v56  ;;  %v1131_v60 = vmul.f32 0.03125, %v1128_v58 }
 0xc85   :  { %v1133_v62 = vsub.f32 %v1122_v53, %v1131_v60  ;;  %v1134_v63 = vmul.f32 %v1132_v59, %v1132_v59 }
 0xc87   :  { %v1136_v1 = vsel %vm93_vm1, %v1134_v63, 0.0  ;;  %v1135_v2 = vmul.f32 %v1133_v62, %v1133_v62 }
 0xc88   :  { %1137 = vadd.xlane.f32.xlu0 %v1136_v1  ;;  %v1420_v1 = vld [vmem:[%s2100_s11] ss:$0 sm:$0xff] }
 0xc89   :  { %v1139_v3 = vsel %vm93_vm1, %v1135_v2, 0.0 }
 0xc8a   :  { %1140 = vadd.xlane.f32.xlu1 %v1139_v3 }
 0xd15   :  { %v1138_v49 = vpop.xlane.xlu0 %1137 }
 0xd16   :  { %v1142_v5 = vmul.f32 0.03125, %v1138_v49 }
 0xd17   :  { %v1141_v6 = vpop.xlane.xlu1 %1140 }
 0xd18   :  { %v1144_v7 = vadd.f32 1e-05, %v1142_v5  ;;  %v1143_v8 = vmul.f32 0.03125, %v1141_v6 }
 0xd1a   :  { %1679 = vrsqrt.f32 %v1144_v7  ;;  %v1145_v9 = vadd.f32 1e-05, %v1143_v8 }
 0xd1c   :  { %1681 = vrsqrt.f32 %v1145_v9 }
 0xd24   :  { %v1680_v10 = vpop.eup %1679 }
 0xd25   :  { %v1148_v13 = vmul.f32 %v1680_v10, %v1132_v59 }
 0xd26   :  { %v1682_v15 = vpop.eup %1681 }
 0xd27   :  { %v1156_v14 = vmul.f32 %v1408_v12, %v1148_v13  ;;  %v1149_v16 = vmul.f32 %v1682_v15, %v1133_v62 }
 0xd29   :  { %v1157_v18 = vmul.f32 %v1408_v12, %v1149_v16  ;;  %v1164_v19 = vadd.f32 %v1409_v17, %v1156_v14 }
 0xd2b   :  { %v1165_v20 = vadd.f32 %v1409_v17, %v1157_v18 }
 0xd2d   :  { %v1166_v21 = vpack.c.bf16 %v1165_v20, %v1164_v19 }
 0xd2f   :  { %1587 = vmatmul.mubr.msk.bf16.vlgmr.msra.gmra.mrb[36].mxu0 %vm93_vm1, %v1166_v21 }
 0xe02   :  { %v1226_v25 = vpop.f32.mrb[36].mxu0 }
 0xe03   :  { %v1227_v26 = vadd.f32 %v1410_v24, %v1226_v25  ;;  %v1588_v27 = vpop.f32.mrb[37].mxu0 }
 0xe04   :  { %v1229_v28 = vpop.f32.mrb[38].mxu0 }
 0xe05   :  { %v1230_v29 = vadd.f32 %v1410_v24, %v1229_v28  ;;  %v1589_v30 = vpop.f32.mrb[39].mxu0  ;;  %v1233_v31 = vmax.f32 %v1227_v26, 0.0 }
 0xe07   :  { %v1234_v32 = vmax.f32 %v1230_v29, 0.0 }
 0xe09   :  { %v1235_v33 = vpack.c.bf16 %v1234_v32, %v1233_v31 }
 0xe0b   :  { %1599 = vmatmul.mubr.msk.bf16.vlgmr.msra.gmra.mrb[36].mxu1 %vm1274_vm6, %v1235_v33 }
 0xede   :  { %v1312_v34 = vpop.f32.mrb[36].mxu1 }
 0xedf   :  { %v1313_v35 = vadd.f32 %v1414_v0, %v1312_v34  ;;  %v1600_v36 = vpop.f32.mrb[37].mxu1 }
 0xee0   :  { %v1315_v37 = vpop.f32.mrb[38].mxu1 }
 0xee1   :  { %v1316_v38 = vadd.f32 %v1414_v0, %v1315_v37  ;;  %v1601_v39 = vpop.f32.mrb[39].mxu1  ;;  %v1319_v40 = vadd.f32 %v1313_v35, %v1164_v19 }
 0xee3   :  { %v1321_v41 = vsel %vm93_vm1, %v1319_v40, 0.0  ;;  %v1320_v42 = vadd.f32 %v1316_v38, %v1165_v20 }
 0xee4   :  { %1322 = vadd.xlane.f32.xlu0 %v1321_v41 }
 0xee5   :  { %v1324_v43 = vsel %vm93_vm1, %v1320_v42, 0.0 }
 0xee6   :  { %1325 = vadd.xlane.f32.xlu1 %v1324_v43 }
 0xf71   :  { %v1323_v61 = vpop.xlane.xlu0 %1322 }
 0xf72   :  { %v1327_v45 = vmul.f32 0.03125, %v1323_v61 }
 0xf73   :  { %v1326_v46 = vpop.xlane.xlu1 %1325 }
 0xf74   :  { %v1329_v57 = vsub.f32 %v1319_v40, %v1327_v45  ;;  %v1328_v47 = vmul.f32 0.03125, %v1326_v46 }
 0xf76   :  { %v1330_v50 = vsub.f32 %v1320_v42, %v1328_v47  ;;  %v1331_v51 = vmul.f32 %v1329_v57, %v1329_v57 }
 0xf78   :  { %v1333_v52 = vsel %vm93_vm1, %v1331_v51, 0.0  ;;  %v1332_v53 = vmul.f32 %v1330_v50, %v1330_v50 }
 0xf79   :  { %1334 = vadd.xlane.f32.xlu0 %v1333_v52 }
 0xf7a   :  { %v1336_v54 = vsel %vm93_vm1, %v1332_v53, 0.0 }
 0xf7b   :  { %1337 = vadd.xlane.f32.xlu1 %v1336_v54 }
0x1006   :  { %v1335_v55 = vpop.xlane.xlu0 %1334 }
0x1007   :  { %v1339_v56 = vmul.f32 0.03125, %v1335_v55 }
0x1008   :  { %v1338_v58 = vpop.xlane.xlu1 %1337 }
0x1009   :  { %v1341_v59 = vadd.f32 1e-05, %v1339_v56  ;;  %v1340_v60 = vmul.f32 0.03125, %v1338_v58 }
0x100b   :  { %1683 = vrsqrt.f32 %v1341_v59  ;;  %v1342_v62 = vadd.f32 1e-05, %v1340_v60 }
0x100d   :  { %1685 = vrsqrt.f32 %v1342_v62 }
0x1015   :  { %v1684_v63 = vpop.eup %1683 }
0x1016   :  { %v1345_v2 = vmul.f32 %v1684_v63, %v1329_v57 }
0x1017   :  { %v1686_v3 = vpop.eup %1685 }
0x1018   :  { %v1353_v4 = vmul.f32 %v1420_v1, %v1345_v2  ;;  %v1346_v44 = vmul.f32 %v1686_v3, %v1330_v50 }
0x101a   :  { %v1354_v48 = vmul.f32 %v1420_v1, %v1346_v44  ;;  %v1361_v49 = vadd.f32 %v1421_v11, %v1353_v4 }
0x101c   :  { %v1362_v5 = vadd.f32 %v1421_v11, %v1354_v48  ;;  %1363 = vst.msk [vmem:[#allocation5] sm:$0xff] %vm93_vm1, %v1361_v49 }
0x101e   :  { %1364 = vst.msk [vmem:[#allocation5 + $0x8] sm:$0xff] %vm93_vm1, %v1362_v5 }
0x101f   :  { %1720 = shalt.err (!%p1717_p12)
}
0x1020   :  { %s1721_s25 = scalar_lea.hbm %s2102_s13, 256 }
0x1021   :  { %p1722_p13 = scmp.ne.s32.totalorder %s2102_s13, %s1721_s25  ;;  %p1725_p0 = scmp.lt.u32.totalorder %s1721_s25, %s2102_s13 }
0x1023   :  { %p1727_p1 = pnand %p1725_p0, %p1722_p13 }
0x1025   :  { %1730 = shalt.err (!%p1727_p1)
}
0x1026   :  { %s1754_s28 = smov 128  }
0x1027   :  { %1376 = dma.vmem_to_hbm [thread:$0]  %s1371_s7, 256, %s2102_s13, [#allocation4], %s1754_s28, %s1754_s28, %s1750_s21  }
0x1028   :  { %1733 = dma.done.wait [#allocation4], 256  }
0x1029   :  { %1734 = vsyncadd [#allocation4], 4294967040 }
0x102a   :  { %1380 = vsyncpa [#allocation3], 1 }
0x102b   :  { %1381 = vsyncpa [#allocation4], 1 }

</bundles_post_ra>
